<compile_context>
chip_gen: v6e
topology: v6e:2x2x1
jax: 0.10.0
libtpu: 0.0.40
codegen_flags: <defaults>
</compile_context>

<pallas_src>
import functools

import jax
import jax.numpy as jnp
from jax.experimental import pallas as pl
from jax.experimental.pallas import tpu as pltpu

EPS = 1e-5


# ----------------------------------------------------------------------------
# Kernel
# ----------------------------------------------------------------------------
def _res_block_kernel(
    x1_ref,                    # (M, 3*W*Cin)     unfolded input, bf16
    w1_ref,                    # (3*W*Cin, Wo*Cout)  banded conv1 (BN1 scale folded), bf16
    b1_ref,                    # (1, Wo*Cout)     BN1 bias, f32
    w2_ref,                    # (3*Wo*Cout, Wo*Cout) banded conv2 (BN2 scale folded), bf16
    b2_ref,                    # (1, Wo*Cout)     BN2 bias, f32
    *rest,                     # [ws_ref, bs_ref,] o_ref, hp_ref
    bt,
    ho,
    has_projection,
):
    if has_projection:
        ws_ref, bs_ref, o_ref, hp_ref = rest
    else:
        o_ref, hp_ref = rest

    m = bt * ho                        # fused matmul M (rows per grid step)
    wc = x1_ref.shape[1] // 3          # W*Cin  (lanes per unfold slot)
    w2n = o_ref.shape[1]               # Wo*Cout (output lanes)

    x1 = x1_ref[...]                   # load once; reused by conv1 and shortcut

    # ---- conv1 (+ folded BN1 scale) as a single K=3*W*Cin matmul -------------
    acc1 = jnp.dot(x1, w1_ref[...], preferred_element_type=jnp.float32)
    h1 = jnp.maximum(acc1 + b1_ref[...], 0.0)
    h1b = h1.astype(jnp.bfloat16)      # single f32->bf16 cast

    # ---- stage conv2's K-folded lhs (slots: center, up, down) ----------------
    hp_ref[:, 0:w2n] = h1b                          # center: input row r
    hp_ref[1:m, w2n:2 * w2n] = h1b[0:m - 1]         # up:     input row r-1
    hp_ref[0:m - 1, 2 * w2n:3 * w2n] = h1b[1:m]     # down:   input row r+1
    zrow = jnp.zeros((1, w2n), hp_ref.dtype)
    for b in range(bt):                # per-image H halo rows (tiny static loop)
        hp_ref[b * ho:b * ho + 1, w2n:2 * w2n] = zrow
        hp_ref[(b + 1) * ho - 1:(b + 1) * ho, 2 * w2n:3 * w2n] = zrow

    # ---- conv2 (+ folded BN2 scale) as a single matmul ------------------------
    acc2 = jnp.dot(hp_ref[...], w2_ref[...], preferred_element_type=jnp.float32)
    out = acc2 + b2_ref[...]

    # ---- shortcut: center slot of the unfolded input == strided x rows --------
    if has_projection:
        sc = jnp.dot(x1[:, 0:wc], ws_ref[...], preferred_element_type=jnp.float32)
        sc = sc + bs_ref[...]
    else:
        sc = x1[:, 0:wc].astype(jnp.float32)        # identity: no matmul at all

    # ---- residual add + ReLU (lane-dense store) --------------------------------
    o_ref[...] = jnp.maximum(out + sc, 0.0).astype(o_ref.dtype)


# ----------------------------------------------------------------------------
# Wrapper-side preparation (one-time weight/input preprocessing)
# ----------------------------------------------------------------------------
def _fold_bn(bn):
    gamma, beta, mean, var = bn
    scale = gamma / jnp.sqrt(var + EPS)
    bias = beta - mean * scale
    return scale.astype(jnp.float32), bias.astype(jnp.float32)


def _band_conv3x3(w_hwio, w_in, w_out, stride, scale):
    """3x3 'same' (padding=1) conv over the packed W*C lane axis, lowered to a
    K-stacked banded matrix (3*w_in*Cin, w_out*Cout).  Slot order along K is
    (center, up, down) to match the unfolded lhs; width padding, stride and the
    per-output-channel BN scale are folded in (f32, before the bf16 cast)."""
    w = w_hwio.astype(jnp.float32) * scale[None, None, None, :]
    wi = jnp.arange(w_in)[:, None]
    wo = jnp.arange(w_out)[None, :]
    blocks = []
    for dy in (1, 0, 2):                     # center, up, down
        blk = jnp.zeros((w_in * w.shape[2], w_out * w.shape[3]), jnp.float32)
        for dx in range(3):
            sel = (wi == wo * stride + dx - 1).astype(jnp.float32)
            blk = blk + jnp.kron(sel, w[dy, dx])
        blocks.append(blk)
    return jnp.concatenate(blocks, axis=0)


def _band_conv1x1(w2d, w_in, w_out, stride, scale):
    """1x1 (projection shortcut) conv over the packed lane axis with BN scale
    folded: (w_in*Cin, w_out*Cout)."""
    w = w2d.astype(jnp.float32) * scale[None, :]
    sel = (jnp.arange(w_in)[:, None]
           == jnp.arange(w_out)[None, :] * stride).astype(jnp.float32)
    return jnp.kron(sel, w)


def _unfold_rows(x_packed, ho, stride):
    """(N, H, W*Cin) -> (N, Ho, 3*W*Cin) bf16; slots (center, up, down) with H
    padding and stride folded in (no strided/staging work left in-kernel)."""
    xp = jnp.pad(x_packed, ((0, 0), (1, 1), (0, 0)))

    def take(dy):
        return jax.lax.slice_in_dim(xp, dy, dy + (ho - 1) * stride + 1, stride, axis=1)

    return jnp.concatenate([take(1), take(0), take(2)], axis=-1).astype(jnp.bfloat16)


def _pick_bt(n, ho, target_rows=256):
    """Batch-tile size: fuse up to ~target_rows rows into the matmul M dim, but
    keep >= 2 grid steps when possible (v7x has 2 TensorCores per chip)."""
    cap = max(1, target_rows // ho)
    if n >= 2:
        cap = min(cap, (n + 1) // 2)
    bt = 1
    for d in range(1, n + 1):
        if n % d == 0 and d <= cap:
            bt = d
    return bt


# ----------------------------------------------------------------------------
# Public entry point
# ----------------------------------------------------------------------------
def residual_block(x_nchw, params, stride=1):
    """Pallas ResidualBlock forward.  x_nchw: (N, Cin, H, W) -> (N, Cout, Ho, Wo)."""
    n, cin, h, w = x_nchw.shape
    cout = params["w1"].shape[0]
    ho = (h + 2 - 3) // stride + 1
    wo = (w + 2 - 3) // stride + 1
    has_projection = (stride != 1) or (cin != cout)
    wc = w * cin
    w2n = wo * cout
    bt = _pick_bt(n, ho)
    m = bt * ho

    s1, b1 = _fold_bn(params["bn1"])
    s2, b2 = _fold_bn(params["bn2"])

    # OIHW -> HWIO, then lower to K-stacked banded matrices (scale folded, bf16).
    w1_hwio = jnp.transpose(params["w1"], (2, 3, 1, 0))
    w2_hwio = jnp.transpose(params["w2"], (2, 3, 1, 0))
    w1b = _band_conv3x3(w1_hwio, w, wo, stride, s1).astype(jnp.bfloat16)   # (3*wc, w2n)
    w2b = _band_conv3x3(w2_hwio, wo, wo, 1, s2).astype(jnp.bfloat16)       # (3*w2n, w2n)
    b1t = jnp.tile(b1, wo).reshape(1, w2n)
    b2t = jnp.tile(b2, wo).reshape(1, w2n)

    # Pack + pre-unfold the input (H pad, stride and bf16 cast done once here).
    x_packed = jnp.transpose(x_nchw, (0, 2, 3, 1)).reshape(n, h, wc)
    x1 = _unfold_rows(x_packed, ho, stride).reshape(n * ho, 3 * wc)

    inputs = [x1, w1b, b1t, w2b, b2t]
    in_specs = [
        pl.BlockSpec((m, 3 * wc), lambda b: (b, 0)),
        pl.BlockSpec((3 * wc, w2n), lambda b: (0, 0)),
        pl.BlockSpec((1, w2n), lambda b: (0, 0)),
        pl.BlockSpec((3 * w2n, w2n), lambda b: (0, 0)),
        pl.BlockSpec((1, w2n), lambda b: (0, 0)),
    ]
    if has_projection:
        ss, bs = _fold_bn(params["bns"])
        ws2d = jnp.transpose(params["ws"][:, :, 0, 0], (1, 0))              # (Cin, Cout)
        wsb = _band_conv1x1(ws2d, w, wo, stride, ss).astype(jnp.bfloat16)   # (wc, w2n)
        bst = jnp.tile(bs, wo).reshape(1, w2n)
        inputs += [wsb, bst]
        in_specs += [
            pl.BlockSpec((wc, w2n), lambda b: (0, 0)),
            pl.BlockSpec((1, w2n), lambda b: (0, 0)),
        ]

    kernel = functools.partial(_res_block_kernel, bt=bt, ho=ho,
                               has_projection=has_projection)

    # Per-step VMEM footprint is tiny (<1 MiB): safe on v5e/v6e and on v7x's
    # 64 MiB physical VMEM with the 32 MiB explicit limit below.
    out_packed = pl.pallas_call(
        kernel,
        out_shape=jax.ShapeDtypeStruct((n * ho, w2n), x_nchw.dtype),
        grid_spec=pltpu.PrefetchScalarGridSpec(
            num_scalar_prefetch=0,
            grid=(n // bt,),
            in_specs=in_specs,
            out_specs=pl.BlockSpec((m, w2n), lambda b: (b, 0)),
            scratch_shapes=[
                pltpu.VMEM((m, 3 * w2n), jnp.bfloat16),   # K-folded conv2 lhs
            ],
        ),
        compiler_params=pltpu.CompilerParams(
            dimension_semantics=("parallel",),
            vmem_limit_bytes=32 * 1024 * 1024,
        ),
    )(*inputs)

    # Unpack lane layout back to NCHW.
    return jnp.transpose(out_packed.reshape(n, ho, wo, cout), (0, 3, 1, 2))


# ----------------------------------------------------------------------------
# Pure-JAX reference (matches the PyTorch module in eval mode)
# ----------------------------------------------------------------------------
def _ref_residual_block(x, params, stride):
    def conv(x, w, s, pad):
        return jax.lax.conv_general_dilated(
            x, w, (s, s), ((pad, pad), (pad, pad)),
            dimension_numbers=("NCHW", "OIHW", "NCHW"))

    def bn(x, p):
        g, b, m, v = p
        return ((x - m[None, :, None, None])
                / jnp.sqrt(v[None, :, None, None] + EPS)
                * g[None, :, None, None] + b[None, :, None, None])

    out = jax.nn.relu(bn(conv(x, params["w1"], stride, 1), params["bn1"]))
    out = bn(conv(out, params["w2"], 1, 1), params["bn2"])
    cin, cout = params["w1"].shape[1], params["w1"].shape[0]
    if stride != 1 or cin != cout:
        sc = bn(conv(x, params["ws"], stride, 0), params["bns"])
    else:
        sc = x
    return jax.nn.relu(out + sc)


# ----------------------------------------------------------------------------
# Test
# ----------------------------------------------------------------------------
if __name__ == "__main__":
    key = jax.random.PRNGKey(0)

    def bn_params(k, c):
        k1, k2, k3, k4 = jax.random.split(k, 4)
        return (1.0 + 0.1 * jax.random.normal(k1, (c,), jnp.float32),     # gamma
                0.1 * jax.random.normal(k2, (c,), jnp.float32),           # beta
                0.1 * jax.random.normal(k3, (c,), jnp.float32),           # running_mean
                jnp.abs(jax.random.normal(k4, (c,), jnp.float32)) + 0.5)  # running_var

    def make_params(k, cin, cout, stride):
        k1, k2, k3, k4, k5, k6 = jax.random.split(k, 6)
        p = {
            "w1": 0.1 * jax.random.normal(k1, (cout, cin, 3, 3), jnp.float32),
            "bn1": bn_params(k2, cout),
            "w2": 0.1 * jax.random.normal(k3, (cout, cout, 3, 3), jnp.float32),
            "bn2": bn_params(k4, cout),
        }
        if stride != 1 or cin != cout:
            p["ws"] = 0.1 * jax.random.normal(k5, (cout, cin, 1, 1), jnp.float32)
            p["bns"] = bn_params(k6, cout)
        return p

    configs = [
        # (N, Cin, Cout, H, W, stride)
        (2, 4, 8, 16, 16, 1),    # channel change -> projection shortcut
        (4, 8, 8, 16, 16, 1),    # identity shortcut, batch fusion (BT=2)
        (2, 8, 16, 16, 16, 2),   # stride-2 projection shortcut
    ]

    for idx, (n, cin, cout, h, w, stride) in enumerate(configs):
        kp, kx = jax.random.split(jax.random.fold_in(key, idx))
        params = make_params(kp, cin, cout, stride)
        x = jax.random.normal(kx, (n, cin, h, w), jnp.float32)

        out = jax.block_until_ready(residual_block(x, params, stride=stride))
        ref = _ref_residual_block(x, params, stride)

        assert out.shape == (n, cout, h // stride, w // stride), out.shape
        max_err = float(jnp.max(jnp.abs(out - ref)))
        # Matmul operands are fed to the MXU in bf16 (f32 accumulation), so the
        # tolerance is loosened versus a pure-f32 run.
        assert max_err < 5e-2, f"config {idx}: max abs err = {max_err}"

    print("KERNEL_OK")
</pallas_src>

<mosaic_0001>
module attributes {stable_mosaic.version = 11 : i64} {
  func.func @_res_block_kernel(%arg0: i32, %arg1: memref<16x192xbf16, #tpu.memory_space<vmem>>, %arg2: memref<192x128xbf16, #tpu.memory_space<vmem>>, %arg3: memref<1x128xf32, #tpu.memory_space<vmem>>, %arg4: memref<384x128xbf16, #tpu.memory_space<vmem>>, %arg5: memref<1x128xf32, #tpu.memory_space<vmem>>, %arg6: memref<64x128xbf16, #tpu.memory_space<vmem>>, %arg7: memref<1x128xf32, #tpu.memory_space<vmem>>, %arg8: memref<16x128xf32, #tpu.memory_space<vmem>>, %arg9: memref<16x384xbf16, #tpu.memory_space<vmem>>) attributes {dimension_semantics = [#tpu.dimension_semantics<parallel>], iteration_bounds = array<i64: 2>, scalar_prefetch = 0 : i64, scratch_operands = 1 : i64, tpu.core_type = #tpu.core_type<tc>, window_params = [{transform_indices = @transform_0, window_bounds = array<i64: 16, 192>}, {pipeline_mode = #tpu.pipeline_mode<synchronous>, transform_indices = @transform_1, window_bounds = array<i64: 192, 128>}, {pipeline_mode = #tpu.pipeline_mode<synchronous>, transform_indices = @transform_2, window_bounds = array<i64: 1, 128>}, {pipeline_mode = #tpu.pipeline_mode<synchronous>, transform_indices = @transform_3, window_bounds = array<i64: 384, 128>}, {pipeline_mode = #tpu.pipeline_mode<synchronous>, transform_indices = @transform_4, window_bounds = array<i64: 1, 128>}, {pipeline_mode = #tpu.pipeline_mode<synchronous>, transform_indices = @transform_5, window_bounds = array<i64: 64, 128>}, {pipeline_mode = #tpu.pipeline_mode<synchronous>, transform_indices = @transform_6, window_bounds = array<i64: 1, 128>}, {transform_indices = @transform_7, window_bounds = array<i64: 16, 128>}]} {
    %c0 = arith.constant 0 : index
    %c0_0 = arith.constant 0 : index
    %0 = vector.load %arg1[%c0, %c0_0] : memref<16x192xbf16, #tpu.memory_space<vmem>>, vector<16x192xbf16>
    %c0_1 = arith.constant 0 : index
    %c0_2 = arith.constant 0 : index
    %1 = vector.load %arg2[%c0_1, %c0_2] : memref<192x128xbf16, #tpu.memory_space<vmem>>, vector<192x128xbf16>
    %cst = arith.constant dense<0.000000e+00> : vector<16x128xf32>
    %2 = tpu.matmul %0, %1, %cst {dimension_numbers = #tpu.dot_dimension_numbers<[1], [0], [0], [1], [0, 0, 1, 1], [], []>} : vector<16x192xbf16>, vector<192x128xbf16>, vector<16x128xf32> -> vector<16x128xf32>
    %c0_3 = arith.constant 0 : index
    %c0_4 = arith.constant 0 : index
    %3 = vector.load %arg3[%c0_3, %c0_4] : memref<1x128xf32, #tpu.memory_space<vmem>>, vector<1x128xf32>
    %4 = vector.broadcast %3 : vector<1x128xf32> to vector<16x128xf32>
    %5 = arith.addf %2, %4 : vector<16x128xf32>
    %cst_5 = arith.constant 0.000000e+00 : f32
    %6 = vector.broadcast %cst_5 : f32 to vector<16x128xf32>
    %7 = arith.maximumf %5, %6 : vector<16x128xf32>
    %8 = arith.truncf %7 : vector<16x128xf32> to vector<16x128xbf16>
    %c0_6 = arith.constant 0 : index
    %c0_7 = arith.constant 0 : index
    %9 = vector.load %arg9[%c0_6, %c0_7] : memref<16x384xbf16, #tpu.memory_space<vmem>>, vector<16x128xbf16>
    tpu.vector_store %arg9[%c0_6, %c0_7], %8 {strides = array<i32>} : memref<16x384xbf16, #tpu.memory_space<vmem>>, vector<16x128xbf16>,
    %10 = vector.extract_strided_slice %8 {offsets = [0, 0], sizes = [15, 128], strides = [1, 1]} : vector<16x128xbf16> to vector<15x128xbf16>
    %c1 = arith.constant 1 : index
    %c128 = arith.constant 128 : index
    %11 = vector.load %arg9[%c1, %c128] : memref<16x384xbf16, #tpu.memory_space<vmem>>, vector<15x128xbf16>
    tpu.vector_store %arg9[%c1, %c128], %10 {strides = array<i32>} : memref<16x384xbf16, #tpu.memory_space<vmem>>, vector<15x128xbf16>,
    %12 = vector.extract_strided_slice %8 {offsets = [1, 0], sizes = [15, 128], strides = [1, 1]} : vector<16x128xbf16> to vector<15x128xbf16>
    %c0_8 = arith.constant 0 : index
    %c256 = arith.constant 256 : index
    %13 = vector.load %arg9[%c0_8, %c256] : memref<16x384xbf16, #tpu.memory_space<vmem>>, vector<15x128xbf16>
    tpu.vector_store %arg9[%c0_8, %c256], %12 {strides = array<i32>} : memref<16x384xbf16, #tpu.memory_space<vmem>>, vector<15x128xbf16>,
    %cst_9 = arith.constant 0.000000e+00 : bf16
    %14 = vector.broadcast %cst_9 : bf16 to vector<1x128xbf16>
    %c0_10 = arith.constant 0 : index
    %c128_11 = arith.constant 128 : index
    %15 = vector.load %arg9[%c0_10, %c128_11] : memref<16x384xbf16, #tpu.memory_space<vmem>>, vector<1x128xbf16>
    tpu.vector_store %arg9[%c0_10, %c128_11], %14 {strides = array<i32>} : memref<16x384xbf16, #tpu.memory_space<vmem>>, vector<1x128xbf16>,
    %c15 = arith.constant 15 : index
    %c256_12 = arith.constant 256 : index
    %16 = vector.load %arg9[%c15, %c256_12] : memref<16x384xbf16, #tpu.memory_space<vmem>>, vector<1x128xbf16>
    tpu.vector_store %arg9[%c15, %c256_12], %14 {strides = array<i32>} : memref<16x384xbf16, #tpu.memory_space<vmem>>, vector<1x128xbf16>,
    %c0_13 = arith.constant 0 : index
    %c0_14 = arith.constant 0 : index
    %17 = vector.load %arg9[%c0_13, %c0_14] : memref<16x384xbf16, #tpu.memory_space<vmem>>, vector<16x384xbf16>
    %c0_15 = arith.constant 0 : index
    %c0_16 = arith.constant 0 : index
    %18 = vector.load %arg4[%c0_15, %c0_16] : memref<384x128xbf16, #tpu.memory_space<vmem>>, vector<384x128xbf16>
    %cst_17 = arith.constant dense<0.000000e+00> : vector<16x128xf32>
    %19 = tpu.matmul %17, %18, %cst_17 {dimension_numbers = #tpu.dot_dimension_numbers<[1], [0], [0], [1], [0, 0, 1, 1], [], []>} : vector<16x384xbf16>, vector<384x128xbf16>, vector<16x128xf32> -> vector<16x128xf32>
    %c0_18 = arith.constant 0 : index
    %c0_19 = arith.constant 0 : index
    %20 = vector.load %arg5[%c0_18, %c0_19] : memref<1x128xf32, #tpu.memory_space<vmem>>, vector<1x128xf32>
    %21 = vector.broadcast %20 : vector<1x128xf32> to vector<16x128xf32>
    %22 = arith.addf %19, %21 : vector<16x128xf32>
    %23 = vector.extract_strided_slice %0 {offsets = [0, 0], sizes = [16, 64], strides = [1, 1]} : vector<16x192xbf16> to vector<16x64xbf16>
    %c0_20 = arith.constant 0 : index
    %c0_21 = arith.constant 0 : index
    %24 = vector.load %arg6[%c0_20, %c0_21] : memref<64x128xbf16, #tpu.memory_space<vmem>>, vector<64x128xbf16>
    %cst_22 = arith.constant dense<0.000000e+00> : vector<16x128xf32>
    %25 = tpu.matmul %23, %24, %cst_22 {dimension_numbers = #tpu.dot_dimension_numbers<[1], [0], [0], [1], [0, 0, 1, 1], [], []>} : vector<16x64xbf16>, vector<64x128xbf16>, vector<16x128xf32> -> vector<16x128xf32>
    %c0_23 = arith.constant 0 : index
    %c0_24 = arith.constant 0 : index
    %26 = vector.load %arg7[%c0_23, %c0_24] : memref<1x128xf32, #tpu.memory_space<vmem>>, vector<1x128xf32>
    %27 = vector.broadcast %26 : vector<1x128xf32> to vector<16x128xf32>
    %28 = arith.addf %25, %27 : vector<16x128xf32>
    %29 = arith.addf %22, %28 : vector<16x128xf32>
    %cst_25 = arith.constant 0.000000e+00 : f32
    %30 = vector.broadcast %cst_25 : f32 to vector<16x128xf32>
    %31 = arith.maximumf %29, %30 : vector<16x128xf32>
    %c0_26 = arith.constant 0 : index
    %c0_27 = arith.constant 0 : index
    %32 = vector.load %arg8[%c0_26, %c0_27] : memref<16x128xf32, #tpu.memory_space<vmem>>, vector<16x128xf32>
    tpu.vector_store %arg8[%c0_26, %c0_27], %31 {strides = array<i32>} : memref<16x128xf32, #tpu.memory_space<vmem>>, vector<16x128xf32>,
    return
  }
  func.func @transform_0(%arg0: i32) -> (i32, i32) {
    %c0_i32 = arith.constant 0 : i32
    %c0_i32_0 = arith.constant 0 : i32
    return %arg0, %c0_i32 : i32, i32
  }
  func.func @transform_1(%arg0: i32) -> (i32, i32) {
    %c0_i32 = arith.constant 0 : i32
    %c0_i32_0 = arith.constant 0 : i32
    %c0_i32_1 = arith.constant 0 : i32
    return %c0_i32, %c0_i32_0 : i32, i32
  }
  func.func @transform_2(%arg0: i32) -> (i32, i32) {
    %c0_i32 = arith.constant 0 : i32
    %c0_i32_0 = arith.constant 0 : i32
    %c0_i32_1 = arith.constant 0 : i32
    return %c0_i32, %c0_i32_0 : i32, i32
  }
  func.func @transform_3(%arg0: i32) -> (i32, i32) {
    %c0_i32 = arith.constant 0 : i32
    %c0_i32_0 = arith.constant 0 : i32
    %c0_i32_1 = arith.constant 0 : i32
    return %c0_i32, %c0_i32_0 : i32, i32
  }
  func.func @transform_4(%arg0: i32) -> (i32, i32) {
    %c0_i32 = arith.constant 0 : i32
    %c0_i32_0 = arith.constant 0 : i32
    %c0_i32_1 = arith.constant 0 : i32
    return %c0_i32, %c0_i32_0 : i32, i32
  }
  func.func @transform_5(%arg0: i32) -> (i32, i32) {
    %c0_i32 = arith.constant 0 : i32
    %c0_i32_0 = arith.constant 0 : i32
    %c0_i32_1 = arith.constant 0 : i32
    return %c0_i32, %c0_i32_0 : i32, i32
  }
  func.func @transform_6(%arg0: i32) -> (i32, i32) {
    %c0_i32 = arith.constant 0 : i32
    %c0_i32_0 = arith.constant 0 : i32
    %c0_i32_1 = arith.constant 0 : i32
    return %c0_i32, %c0_i32_0 : i32, i32
  }
  func.func @transform_7(%arg0: i32) -> (i32, i32) {
    %c0_i32 = arith.constant 0 : i32
    %c0_i32_0 = arith.constant 0 : i32
    return %arg0, %c0_i32 : i32, i32
  }
}

</mosaic_0001>

<bundles_post_ra>
// kernel: tpu_custom_call.1
= control target key start
LH: loop header
LB: loop body
LE: loop exit
PB: predicated region body
PF: predicated region fallthrough
CT: control target
= control target key end

     0   :  { %s1834_s0 = inlined_call_operand.hbm [shape: bf16[32,192], index: 0, kind: input, shape index: {}]   ;;  %s1835_s1 = inlined_call_operand.hbm [shape: bf16[192,128], index: 1, kind: input, shape index: {}]   ;;  %s1836_s2 = inlined_call_operand.vmem [shape: f32[1,128], index: 2, kind: input, shape index: {}]   ;;  %s1837_s3 = inlined_call_operand.hbm [shape: bf16[384,128], index: 3, kind: input, shape index: {}]   ;;  %s1838_s4 = inlined_call_operand.vmem [shape: f32[1,128], index: 4, kind: input, shape index: {}]   ;;  %s1839_s5 = inlined_call_operand.hbm [shape: bf16[64,128], index: 5, kind: input, shape index: {}]   ;;  %s1840_s6 = inlined_call_operand.vmem [shape: f32[1,128], index: 6, kind: input, shape index: {}]   ;;  %s1841_s7 = inlined_call_operand.hbm [shape: f32[32,128], index: 7, kind: output, shape index: {}]  }
   0x1   :  { %1846 = sst [smem:[#allocation16_spill]] %s1835_s1 }
   0x2   :  { %12 = vsyncpa [#allocation4], 0 }
   0x3   :  { %14 = vsyncpa [#allocation4 + $0x1], 0 }
   0x4   :  { %15 = vsyncpa [#allocation7], 0 }
   0x5   :  { %16 = vsyncpa [#allocation10], 0 }
   0x6   :  { %17 = vsyncpa [#allocation5], 0 }
   0x7   :  { %19 = vsyncpa [#allocation5 + $0x1], 0  ;;  %s1593_s24 = smov 0   ;;  %s1595_s25 = smov 0  }
   0x8   :  { %s1597_s26 = smov 0   ;;  %s1599_s27 = smov 0  }
   0x9 LB: > { %s1614_s28 = sadd.s32 4294967295, %s1537_s27   ;;  %s1080_s29 = sadd.s32 4294967294, %s1537_s27   ;;  %s1537_s27 = sphi %s1599_s27, %s1867_s27   ;;  %s1533_s26 = sphi %s1597_s26, %s1866_s26   ;;  %s1529_s25 = sphi %s1595_s25, %s1865_s25   ;;  %s1525_s24 = sphi %s1593_s24, %s1864_s24  }
   0xa   : > { %p45_p0 = scmp.ne.s32.totalorder %s1529_s25, %s1525_s24  ;;  %p1842_p1 = scmp.eq.s32.totalorder %s1614_s28, 0 }
   0xb   : > { %p201_p3 = scmp.eq.s32.totalorder %s1080_s29, 1  ;;  %p1081_p5 = scmp.ge.s32.totalorder %s1537_s27, 1 }
   0xc   : > { %p1623_p4 = por %p1842_p1, %p45_p0  ;;  %p208_p7 = scmp.lt.s32.totalorder %s1537_s27, 3 }
   0xd   : > { %p1628_p6 = por %p201_p3, %p45_p0  ;;  %s1539_s10 = smov [#allocation6]  }
   0xe   : > { %s1847_s30 = scalar_select %p1623_p4, 1, 0 }
   0xf   : > { %s1848_s8 = scalar_select %p1628_p6, 1, 0 }
  0x10   : > { %p1633_p8 = pnand %p1081_p5, %p208_p7  ;;  %s220_s11 = sshll.u32 %s1539_s10, 4  ;;  %s221_s11 = int_to_ptr.vmem [resolvable:$true] %s220_s11 }
  0x11   : > { %s1540_s13 = smov [#allocation8]   ;;  %s1541_s15 = smov [#allocation9]  }
  0x12   : > { %s1849_s9 = scalar_select %p1633_p8, 1, 0 }
  0x13   : > { %p1242_p9 = pneg %p1633_p8  ;;  %s236_s14 = sshll.u32 %s1540_s13, 4  ;;  %s237_s14 = int_to_ptr.vmem [resolvable:$true] %s236_s14 }
  0x14   : > { %s252_s16 = sshll.u32 %s1541_s15, 4  ;;  %s1370_s17 = scalar_lea.vmem %s221_s11, 1536  ;;  %s253_s16 = int_to_ptr.vmem [resolvable:$true] %s252_s16 }
  0x15   : > { %p1642_p11 = pnand %p1242_p9, %p1842_p1  ;;  %p1371_p13 = scmp.ne.s32.totalorder %s221_s11, %s1370_s17 }
  0x16   : > { %p1378_p5 = scmp.lt.s32.totalorder %s221_s11, %s221_s11  ;;  %p1379_p7 = scmp.lt.s32.totalorder %s1370_s17, %s1370_s17 }
  0x17   : > { %p1361_p12 = pneg %p1642_p11 }
  0x18   : > { %p1380_p9 = por %p1379_p7, %p1378_p5 }
  0x19   : > { %p1373_p0 = pnand %p1371_p13, %p1361_p12 }
  0x1b   : > { %p1374_p3 = pneg %p1373_p0 }
  0x1d   : > { %p1381_p10 = pnand %p1380_p9, %p1374_p3 }
  0x1f   : > { %1384 = shalt.err (!%p1381_p10)
}
  0x20   : > { %s1542_s18 = smov 64   ;;  %s1543_s19 = smov 4  }
  0x21   : > { %s1851_s1 = sld [smem:[#allocation16_spill]]  ;;  %s1396_s22 = scalar_lea.vmem %s237_s14, 3072 }
  0x22   : > { %p1397_p1 = scmp.ne.s32.totalorder %s237_s14, %s1396_s22  ;;  %p1404_p2 = scmp.lt.s32.totalorder %s237_s14, %s237_s14 }
  0x23   : > { %p1405_p6 = scmp.lt.s32.totalorder %s1396_s22, %s1396_s22 }
  0x24   : > { %p1399_p13 = pnand %p1397_p1, %p1361_p12 }
  0x25   : > { %p1406_p5 = por %p1405_p6, %p1404_p2 }
  0x26   : > { %p1400_p0 = pneg %p1399_p13 }
  0x27   : > { %1245 = dma.hbm_to_vmem [thread:$0]  (!%p1642_p11), %s1851_s1, 1536, %s221_s11, [#allocation7], %s1542_s18, %s1542_s18, %s1543_s19  }
  0x28   : > { %p1407_p3 = pnand %p1406_p5, %p1400_p0 }
  0x2a   : > { %1410 = shalt.err (!%p1407_p3)
}
  0x2b   : > { %1248 = dma.hbm_to_vmem [thread:$0]  (!%p1642_p11), %s1837_s3, 3072, %s237_s14, [#allocation7], %s1542_s18, %s1542_s18, %s1543_s19  }
  0x2c   : > { %s1422_s10 = scalar_lea.vmem %s253_s16, 512  ;;  %p1430_p9 = scmp.lt.s32.totalorder %s253_s16, %s253_s16 }
  0x2d   : > { %p1423_p10 = scmp.ne.s32.totalorder %s253_s16, %s1422_s10  ;;  %p1431_p13 = scmp.lt.s32.totalorder %s1422_s10, %s1422_s10 }
  0x2f   : > { %p1425_p7 = pnand %p1423_p10, %p1361_p12  ;;  %p1432_p4 = por %p1431_p13, %p1430_p9 }
  0x31   : > { %p1426_p1 = pneg %p1425_p7 }
  0x33   : > { %p1433_p2 = pnand %p1432_p4, %p1426_p1 }
  0x35   : > { %1436 = shalt.err (!%p1433_p2)
}
  0x36   : > { %1251 = dma.hbm_to_vmem [thread:$0]  (!%p1642_p11), %s1839_s5, 512, %s253_s16, [#allocation10], %s1542_s18, %s1542_s18, %s1543_s19  }
  0x37   : > { %s1673_s14 = sadd.s32 1, %s1537_s27   ;;  %s32_s12 = sadd.s32 1, %s1533_s26 }
  0x38   : > { %s29_s15 = ssub.s32 %s1537_s27, %s1673_s14  ;;  %p39_p6 = scmp.ne.s32.totalorder %s1533_s26, %s1529_s25 }
  0x39   : > { %p30_p4 = scmp.eq.s32.totalorder %s29_s15, 0  ;;  %p40_p12 = scmp.eq.s32.totalorder %s1537_s27, 0 }
  0x3a   : > { %p1263_p0 = scmp.lt.s32.totalorder %s1537_s27, 2  ;;  %p1852_p3 = scmp.eq.s32.totalorder %s1614_s28, 1 }
  0x3b   : > { %s1683_s17 = scalar_select %p30_p4, %s1533_s26, %s32_s12  }
  0x3c   : > { %p41_p5 = por %p40_p12, %p39_p6  ;;  %p1687_p10 = por %p1852_p3, %p39_p6 }
  0x3d   : > { %s269_s21 = sand.u32 1, %s1533_s26   ;;  %s1154_s22 = sshll.u32 %s1537_s27, 8 }
  0x3e   : > { %s1853_s20 = scalar_select %p1687_p10, 1, 0 }
  0x3f   : > { %s1086_s16 = sshll.u32 %s269_s21, 4  ;;  %s1696_s23 = scalar_lea.hbm %s1834_s0, %s1154_s22 }
  0x40   : > { %s273_s29 = scalar_lea.vmem [#allocation3], %s1086_s16  ;;  %p1698_p11 = pnand %p1263_p0, %p41_p5 }
  0x41   : > { %s281_s10 = sshll.u32 %s273_s29, 4  ;;  %s1704_s13 = scalar_lea.sflag [#allocation4], %s269_s21  ;;  %s1702_s10 = int_to_ptr.vmem [resolvable:$true] %s281_s10 }
  0x42   : > { %s1437_s15 = scalar_lea.hbm %s1696_s23, 256  ;;  %p1439_p1 = pneg %p1698_p11 }
  0x43   : > { %p1438_p7 = scmp.ne.s32.totalorder %s1696_s23, %s1437_s15  ;;  %s1442_s16 = scalar_lea.hbm %s1834_s0, 512 }
  0x44   : > { %p1443_p2 = scmp.lt.s32.totalorder %s1696_s23, %s1834_s0  ;;  %p1444_p4 = scmp.lt.s32.totalorder %s1442_s16, %s1437_s15 }
  0x45   : > { %p1440_p9 = pnand %p1439_p1, %p1438_p7 }
  0x46   : > { %p1445_p6 = por %p1444_p4, %p1443_p2 }
  0x47   : > { %p1441_p13 = pneg %p1440_p9 }
  0x49   : > { %p1446_p12 = pnand %p1445_p6, %p1441_p13 }
  0x4b   : > { %1449 = shalt.err (!%p1446_p12)
}
  0x4c   : > { %s1450_s21 = scalar_lea.vmem %s1702_s10, 256  ;;  %s1544_s29 = smov [#allocation3]  }
  0x4d   : > { %p1451_p0 = scmp.ne.s32.totalorder %s1702_s10, %s1450_s21  ;;  %s1455_s1 = sshll.u32 %s1544_s29, 4  ;;  %s1456_s1 = int_to_ptr.vmem [resolvable:$false] %s1455_s1 }
  0x4e   : > { %s1457_s12 = scalar_lea.vmem %s1456_s1, 512  ;;  %p1458_p7 = scmp.lt.s32.totalorder %s1702_s10, %s1456_s1 }
  0x4f   : > { %p1453_p5 = pnand %p1451_p0, %p1439_p1  ;;  %p1459_p9 = scmp.lt.s32.totalorder %s1457_s12, %s1450_s21 }
  0x51   : > { %p1454_p3 = pneg %p1453_p5  ;;  %p1460_p10 = por %p1459_p9, %p1458_p7 }
  0x53   : > { %p1461_p8 = pnand %p1460_p10, %p1454_p3 }
  0x55   : > { %1464 = shalt.err (!%p1461_p8)
}
  0x56   : > { %s1545_s15 = smov 128   ;;  %s1546_s22 = smov 8  }
  0x57   : > { %1255 = dma.hbm_to_vmem [thread:$0]  (!%p1698_p11), %s1696_s23, 256, %s1702_s10, %s1704_s13, %s1545_s15, %s1545_s15, %s1546_s22  }
  0x58   : > { %p1855_p1 = scmp.ne.s32.totalorder %s1849_s9, 0 }
  0x59   : > { %s1728_s16 = sand.u32 (!%p1855_p1), 1, %s1529_s25   ;;  %p1856_p8 = scmp.ne.s32.totalorder (!%p1855_p1), %s1847_s30, 0 }
  0x5a   : > { %293 = sbr.rel (%p1855_p1) target bundleno = 624 (0x270), region = 48  ;;  %s1091_s1 = sshll.u32 (!%p1855_p1), %s1728_s16, 4 }
  0x5b   : > { %s296_s18 = scalar_lea.sflag (!%p1855_p1), [#allocation4], %s1728_s16  ;;  %s1734_s19 = scalar_lea.vmem (!%p1855_p1), [#allocation3], %s1091_s1 }
  0x5f   : > { %1508 = dma.done.wait (%p1856_p8), %s296_s18, 256  }
  0x60   : > { %1510 = vsyncadd (%p1856_p8), %s296_s18, 4294967040  ;;  %p1857_p10 = scmp.eq.s32.totalorder %s1614_s28, 0 }
  0x62   : > { %1512 = dma.done.wait (%p1857_p10), [#allocation7], 4608   ;;  %p1858_p11 = pmov %p1857_p10 }
  0x63   : > { %p1859_p13 = pmov %p1857_p10 }
  0x64   : > { %1514 = vsyncadd (%p1858_p11), [#allocation7], 4294962688 }
  0x65   : > { %1516 = dma.done.wait (%p1859_p13), [#allocation10], 512   ;;  %p1860_p2 = pmov %p1857_p10 }
  0x66   : > { %v1547_v0 = vmov 0   ;;  %v1312_v1 = vld [vmem:[#allocation6 + $0x38] sm:$0xff]   ;;  %v1313_v2 = vld [vmem:[#allocation6 + $0x30] sm:$0xff]   ;;  %v1314_v3 = vld [vmem:[#allocation6 + $0x28] sm:$0xff]   ;;  %vm459_vm0 = vcmask 523264   ;;  %v1548_v31 = vmov 0.0  }
  0x67   : > { %1518 = vsyncadd (%p1860_p2), [#allocation10], 4294966784  ;;  %463 = vmatprep.subr.bf16.mxu0 %v1547_v0  ;;  %v1315_v4 = vld [vmem:[#allocation6 + $0x20] sm:$0xff]   ;;  %v1316_v5 = vld [vmem:[#allocation6 + $0x18] sm:$0xff]   ;;  %vm1549_vm1 = vmmov 0   ;;  %vm537_vm2 = vcmask 1043456  }
  0x68   : > { %464 = vmatpush1.bf16.msra.mxu0 %v1312_v1  ;;  %v1326_v6 = vld [vmem:[%s1734_s19 + $0x4] ss:$8 sps:$4 sm:$0xff]   ;;  %v1324_v14 = vld [vmem:[%s1734_s19] ss:$8 sps:$4 sm:$0xff]   ;;  %vm538_vm3 = vsmask.f32 7938 }
  0x69   : > { %465 = vmatprep.subr.bf16.mxu0 %v1547_v0  ;;  %1111 = vmatprep.mubr.msk.bf16.mxu0 %vm459_vm0, %v1326_v6  ;;  %v1317_v7 = vld [vmem:[#allocation6 + $0x10] sm:$0xff]   ;;  %v1318_v8 = vld [vmem:[#allocation6 + $0x8] sm:$0xff]   ;;  %v1319_v9 = vld [vmem:[#allocation6] sm:$0xff]   ;;  %vm516_vm5 = vsmask.f32 256  ;;  %vm563_vm11 = vcmask 1040384  }
  0x6a   : > { %v1320_v10 = vld [vmem:[#allocation6 + $0x58] sm:$0xff]   ;;  %v1321_v11 = vld [vmem:[#allocation6 + $0x50] sm:$0xff]   ;;  %v1322_v12 = vld [vmem:[#allocation6 + $0x48] sm:$0xff]   ;;  %vm544_vm6 = vsmask.f32 3328  ;;  %vm568_vm14 = vcmask 1043459  }
  0x6b   : > { %v1323_v13 = vld [vmem:[#allocation6 + $0x40] sm:$0xff]   ;;  %v1327_v15 = vld [vmem:[#allocation8 + $0x78] sm:$0xff]   ;;  %v1329_v17 = vld [vmem:[#allocation8 + $0x70] sm:$0xff]   ;;  %vm545_vm7 = vsmask.f32 7440  ;;  %s341_s21 = scalar_lea.vmem [#allocation11], %s1091_s1 }
  0x6c   : > { %466 = vmatpush1.bf16.msra.mxu0 %v1313_v2  ;;  %v1328_v16 = vld [vmem:[#allocation8 + $0x38] sm:$0xff]   ;;  %1158 = vmatprep.subr.bf16.mxu1 %v1327_v15  ;;  %v1330_v18 = vld [vmem:[#allocation8 + $0x30] sm:$0xff]   ;;  %v1331_v19 = vld [vmem:[#allocation8 + $0x68] sm:$0xff]   ;;  %vm517_vm8 = vsmask.f32 4368  ;;  %s978_s29 = sshll.u32 %s341_s21, 4  ;;  %s1786_s29 = int_to_ptr.vmem [resolvable:$true] %s978_s29 }
  0x6d   : > { %467 = vmatprep.subr.bf16.mxu0 %v1547_v0  ;;  %1159 = vmatpush3.bf16.msra.mxu1 %v1328_v16  ;;  %v1332_v20 = vld [vmem:[#allocation8 + $0x28] sm:$0xff]   ;;  %v1333_v21 = vld [vmem:[#allocation8 + $0x60] sm:$0xff]   ;;  %v1335_v23 = vld [vmem:[#allocation8 + $0x58] sm:$0xff]   ;;  %vm569_vm15 = vsmask.f32 7950  ;;  %s1157_s12 = sshll.u32 %s1614_s28, 8 }
  0x6e   : > { %1160 = vmatprep.subr.bf16.mxu1 %v1329_v17  ;;  %v1334_v22 = vld [vmem:[#allocation8 + $0x20] sm:$0xff]   ;;  %v1336_v24 = vld [vmem:[#allocation8 + $0x18] sm:$0xff]   ;;  %v1337_v25 = vld [vmem:[#allocation8 + $0x50] sm:$0xff]   ;;  %s1791_s18 = scalar_lea.hbm %s1841_s7, %s1157_s12  ;;  %s965_s1 = scalar_lea.sflag [#allocation5], %s1728_s16 }
  0x6f   : > { %v1338_v26 = vld [vmem:[#allocation8 + $0x10] sm:$0xff]   ;;  %v1339_v27 = vld [vmem:[#allocation8 + $0x48] sm:$0xff]   ;;  %v1341_v29 = vld [vmem:[#allocation8 + $0x40] sm:$0xff]   ;;  %s1465_s19 = scalar_lea.vmem %s1786_s29, 256  ;;  %p1861_p6 = scmp.ne.s32.totalorder %s1853_s20, 0 }
  0x70   : > { %468 = vmatpush1.bf16.msra.mxu0 %v1314_v3  ;;  %v1340_v28 = vld [vmem:[#allocation8 + $0x8] sm:$0xff]   ;;  %v1342_v30 = vld [vmem:[#allocation8] sm:$0xff]   ;;  %v1349_v32 = vld [vmem:[#allocation9 + $0x18] sm:$0xff]   ;;  %p1466_p4 = scmp.ne.s32.totalorder %s1786_s29, %s1465_s19  ;;  %s1550_s28 = smov [#allocation11]  }
  0x71   : > { %469 = vmatprep.subr.bf16.mxu0 %v1547_v0  ;;  %1161 = vmatpush3.bf16.msra.mxu1 %v1330_v18  ;;  %v1351_v33 = vld [vmem:[#allocation9 + $0x10] sm:$0xff]   ;;  %v1353_v34 = vld [vmem:[#allocation9 + $0x8] sm:$0xff]   ;;  %v1355_v35 = vld [vmem:[#allocation9] sm:$0xff]   ;;  %s1469_s30 = sshll.u32 %s1550_s28, 4  ;;  %s1470_s30 = int_to_ptr.vmem [resolvable:$false] %s1469_s30 }
  0x72   : > { %1162 = vmatprep.subr.bf16.mxu1 %v1331_v19  ;;  %v1096_v36 = vld [vmem:[%s1836_s2] ss:$0 sm:$0xff]  ;;  %v540_v49 = vld [vmem:[#allocation2 + $0x4] sm:$0xf]  ;;  %vm539_vm4 = vmand %vm537_vm2, %vm538_vm3  ;;  %p1467_p12 = pnand %p1466_p4, %p1861_p6  ;;  %s1471_s9 = scalar_lea.vmem %s1470_s30, 512 }
  0x73   : > { %vm546_vm9 = vmor %vm544_vm6, %vm545_vm7  ;;  %v560_v3 = vld [vmem:[#allocation2 + $0x14] sm:$0xf]  ;;  %v1350_v15 = vld [vmem:[#allocation8 + $0xa0] sm:$0xff]   ;;  %p1472_p5 = scmp.lt.s32.totalorder %s1786_s29, %s1470_s30  ;;  %p1473_p3 = scmp.lt.s32.totalorder %s1471_s9, %s1465_s19 }
  0x74   : > { %470 = vmatpush1.bf16.msra.mxu0 %v1315_v4  ;;  %vm518_vm10 = vmor %vm516_vm5, %vm517_vm8  ;;  %v1352_v16 = vld [vmem:[#allocation8 + $0x98] sm:$0xff]   ;;  %v1354_v17 = vld [vmem:[#allocation8 + $0x90] sm:$0xff]   ;;  %p1468_p0 = pneg %p1467_p12 }
  0x75   : > { %471 = vmatprep.subr.bf16.mxu0 %v1547_v0  ;;  %1163 = vmatpush3.bf16.msra.mxu1 %v1332_v20  ;;  %vm559_vm12 = vmand %vm537_vm2, %vm544_vm6  ;;  %v1356_v18 = vld [vmem:[#allocation8 + $0x88] sm:$0xff]   ;;  %v1357_v19 = vld [vmem:[#allocation8 + $0x80] sm:$0xff]   ;;  %p1474_p7 = por %p1473_p3, %p1472_p5 }
  0x76   : > { %1164 = vmatprep.subr.bf16.mxu1 %v1333_v21  ;;  %vm564_vm13 = vmand %vm563_vm11, %vm516_vm5 }
  0x77   : > { %p1475_p9 = pnand %p1474_p7, %p1468_p0 }
  0x78   : > { %472 = vmatpush1.bf16.msra.mxu0 %v1316_v5 }
  0x79   : > { %473 = vmatprep.subr.bf16.mxu0 %v1547_v0  ;;  %1165 = vmatpush3.bf16.msra.mxu1 %v1334_v22 }
  0x7a   : > { %1166 = vmatprep.subr.bf16.mxu1 %v1335_v23 }
  0x7c   : > { %474 = vmatpush1.bf16.msra.mxu0 %v1317_v7 }
  0x7d   : > { %475 = vmatprep.subr.bf16.mxu0 %v1547_v0  ;;  %1167 = vmatpush3.bf16.msra.mxu1 %v1336_v24 }
  0x7e   : > { %1168 = vmatprep.subr.bf16.mxu1 %v1337_v25 }
  0x80   : > { %476 = vmatpush1.bf16.msra.mxu0 %v1318_v8 }
  0x81   : > { %477 = vmatprep.subr.bf16.mxu0 %v1547_v0  ;;  %1169 = vmatpush3.bf16.msra.mxu1 %v1338_v26 }
  0x82   : > { %1170 = vmatprep.subr.bf16.mxu1 %v1339_v27 }
  0x84   : > { %478 = vmatpush1.bf16.msra.mxu0 %v1319_v9 }
  0x85   : > { %487 = vmatprep.subr.bf16.mxu0 %v1547_v0  ;;  %1171 = vmatpush3.bf16.msra.mxu1 %v1340_v28 }
  0x86   : > { %1172 = vmatprep.subr.bf16.mxu1 %v1341_v29 }
  0x88   : > { %488 = vmatpush2.bf16.msra.mxu0 %v1320_v10  ;;  %v1346_v10 = vld [vmem:[#allocation8 + $0xb8] sm:$0xff]  }
  0x89   : > { %489 = vmatprep.subr.bf16.mxu0 %v1547_v0  ;;  %1173 = vmatpush3.bf16.msra.mxu1 %v1342_v30  ;;  %v1142_v30 = vld [vmem:[%s1840_s6] ss:$0 sm:$0xff] }
  0x8a   : > { %1194 = vmatprep.subr.bf16.mxu1 %v1548_v31 }
  0x8c   : > { %490 = vmatpush2.bf16.msra.mxu0 %v1321_v11 }
  0x8d   : > { %491 = vmatprep.subr.bf16.mxu0 %v1547_v0 }
  0x90   : > { %492 = vmatpush2.bf16.msra.mxu0 %v1322_v12 }
  0x91   : > { %493 = vmatprep.subr.bf16.mxu0 %v1547_v0 }
  0x94   : > { %494 = vmatpush2.bf16.msra.mxu0 %v1323_v13  ;;  %v1347_v13 = vld [vmem:[#allocation8 + $0xb0] sm:$0xff]  }
  0x95   : > { %1214 = vmatprep.subr.bf16.mxu0 %v1548_v31 }
  0x97   : > { %496 = vmatmul.mubr.bf16.vlgmr.msra.gmra.mxu0 %v1324_v14 }
  0x98   : > { %1215 = vmatpush3.bf16.msra.mxu0 %v1349_v32  ;;  %1222 = vmatprep.mubr.msk.bf16.mxu0 %vm1549_vm1, %v1548_v31 }
  0x99   : > { %1216 = vmatprep.subr.bf16.mxu0 %v1548_v31 }
  0x9c   : > { %1217 = vmatpush3.bf16.msra.mxu0 %v1351_v33 }
  0x9d   : > { %1218 = vmatprep.subr.bf16.mxu0 %v1548_v31 }
  0xa0   : > { %1219 = vmatpush3.bf16.msra.mxu0 %v1353_v34 }
  0xa1   : > { %1220 = vmatprep.subr.bf16.mxu0 %v1548_v31 }
  0xa4   : > { %1221 = vmatpush3.bf16.msra.mxu0 %v1355_v35 }
  0xa7   : > { %1223 = vmatmul.mubr.msk.bf16.vlgmr.msra.gmra.mxu0 %vm459_vm0, %v1324_v14  ;;  %vm570_vm0 = vmand %vm568_vm14, %vm569_vm15  ;;  %v1348_v14 = vld [vmem:[#allocation8 + $0xa8] sm:$0xff]  }
 0x157   : > { %v497_v37 = vpop.f32.mrf.mxu0 }
 0x158   : > { %v498_v38 = vadd.f32 %v1096_v36, %v497_v37 }
 0x159   : > { %v499_v39 = vpop.f32.mrf.mxu0 }
 0x15a   : > { %v504_v40 = vmax.f32 %v498_v38, 0.0 }
 0x15b   : > { %v500_v41 = vpop.f32.mrf.mxu0 }
 0x15c   : > { %v1155_v42 = vpack.c.bf16 %v504_v40, %v504_v40  ;;  %v501_v43 = vadd.f32 %v1096_v36, %v500_v41 }
 0x15d   : > { %v502_v44 = vpop.f32.mrf.mxu0 }
 0x15e   : > { %514 = vst [vmem:[#allocation2] sm:$0xf] %v1155_v42  ;;  %v520_v45 = vshrl.u32 %v1155_v42, 16  ;;  %v523_v46 = vshll.u32 %v1155_v42, 16  ;;  %v505_v47 = vmax.f32 %v501_v43, 0.0 }
 0x160   : > { %v522_v48 = vrot.slane %v520_v45, 7  ;;  %v547_v50 = vrot.slane %v520_v45, 4  ;;  %v548_v51 = vrot.slane %v523_v46, 5  ;;  %v1156_v52 = vpack.c.bf16 %v505_v47, %v505_v47 }
 0x162   : > { %v525_v53 = vor.u32 %v523_v46, %v522_v48  ;;  %v549_v54 = vor.u32 %v548_v51, %v547_v50  ;;  %515 = vst [vmem:[#allocation2 + $0xc] sm:$0xf] %v1156_v52  ;;  %v528_v55 = vshrl.u32 %v1156_v52, 16  ;;  %v531_v56 = vshll.u32 %v1156_v52, 16 }
 0x163   : > { %v526_v62 = vrot.slane %v522_v48, 4 }
 0x164   : > { %v541_v57 = vsel %vm539_vm4, %v525_v53, %v540_v49  ;;  %v550_v58 = vrot.slane %v549_v54, 4  ;;  %v530_v59 = vrot.slane %v528_v55, 7  ;;  %v553_v60 = vrot.slane %v528_v55, 4 }
 0x165   : > { %542 = vst [vmem:[#allocation2 + $0x4] sm:$0xf] %v541_v57  ;;  %v551_v61 = vrot.slane %v531_v56, 5 }
 0x166   : > { %v533_v63 = vor.u32 %v531_v56, %v530_v59 }
 0x167   : > { %v552_v0 = vsel %vm546_vm9, %v550_v58, %v551_v61  ;;  %v554_v1 = vor.u32 %v553_v60, %v551_v61  ;;  %v951_v21 = vpop.f32.mrf.mxu0 }
 0x168   : > { %v534_v2 = vsel %vm518_vm10, %v526_v62, %v533_v63  ;;  %558 = vst [vmem:[#allocation2 + $0x8] sm:$0xf] %v552_v0  ;;  %v952_v33 = vadd.f32 %v1142_v30, %v951_v21 }
 0x169   : > { %543 = vst [vmem:[#allocation2 + $0x10] sm:$0xf] %v534_v2  ;;  %v555_v4 = vrot.slane %v554_v1, 4  ;;  %v1343_v11 = vld [vmem:[#allocation2] ss:$12 sps:$4 sm:$0xff]   ;;  %v1224_v22 = vpop.f32.mrf.mxu0 }
 0x16b   : > { %v561_v5 = vsel %vm559_vm12, %v555_v4, %v560_v3  ;;  %v954_v23 = vpop.f32.mrf.mxu0 }
 0x16c   : > { %562 = vst [vmem:[#allocation2 + $0x14] sm:$0xf] %v561_v5  ;;  %v565_v6 = vld [vmem:[#allocation2 + $0x4] sm:$0x1]  ;;  %v955_v41 = vadd.f32 %v1142_v30, %v954_v23 }
 0x16d   : > { %v566_v7 = vsel %vm564_vm13, 0, %v565_v6  ;;  %v1225_v24 = vpop.f32.mrf.mxu0 }
 0x16e   : > { %567 = vst [vmem:[#allocation2 + $0x4] sm:$0x1] %v566_v7 }
 0x173   : > { %v571_v8 = vld [vmem:[#allocation2 + $0x14] sm:$0x8] }
 0x174   : > { %v572_v9 = vsel %vm570_vm0, 0, %v571_v8 }
 0x175   : > { %573 = vst [vmem:[#allocation2 + $0x14] sm:$0x8] %v572_v9  ;;  %v1345_v12 = vld [vmem:[#allocation2 + $0x4] ss:$12 sps:$4 sm:$0xff]  }
 0x176   : > { %825 = vmatprep.mubr.bf16.mxu1 %v1345_v12 }
 0x177   : > { %826 = vmatmul.mubr.bf16.vlgmr.msra.gmra.mxu1 %v1343_v11 }
 0x178   : > { %1195 = vmatpush3.bf16.msra.mxu1 %v1346_v10  ;;  %1210 = vmatprep.mubr.msk.bf16.mxu1 %vm1549_vm1, %v1548_v31 }
 0x179   : > { %1196 = vmatprep.subr.bf16.mxu1 %v1548_v31 }
 0x17c   : > { %1197 = vmatpush3.bf16.msra.mxu1 %v1347_v13  ;;  %v1358_v20 = vld [vmem:[#allocation2 + $0x8] ss:$12 sps:$4 sm:$0xff]  }
 0x17d   : > { %1198 = vmatprep.subr.bf16.mxu1 %v1548_v31 }
 0x180   : > { %1199 = vmatpush3.bf16.msra.mxu1 %v1348_v14 }
 0x181   : > { %1200 = vmatprep.subr.bf16.mxu1 %v1548_v31 }
 0x184   : > { %1201 = vmatpush3.bf16.msra.mxu1 %v1350_v15 }
 0x185   : > { %1202 = vmatprep.subr.bf16.mxu1 %v1548_v31 }
 0x188   : > { %1203 = vmatpush3.bf16.msra.mxu1 %v1352_v16 }
 0x189   : > { %1204 = vmatprep.subr.bf16.mxu1 %v1548_v31 }
 0x18c   : > { %1205 = vmatpush3.bf16.msra.mxu1 %v1354_v17 }
 0x18d   : > { %1206 = vmatprep.subr.bf16.mxu1 %v1548_v31 }
 0x190   : > { %1207 = vmatpush3.bf16.msra.mxu1 %v1356_v18 }
 0x191   : > { %1208 = vmatprep.subr.bf16.mxu1 %v1548_v31  ;;  %v1114_v31 = vld [vmem:[%s1838_s4] ss:$0 sm:$0xff] }
 0x194   : > { %1209 = vmatpush3.bf16.msra.mxu1 %v1357_v19 }
 0x197   : > { %1211 = vmatmul.mubr.bf16.vlgmr.msra.gmra.mxu1 %v1358_v20 }
 0x237   : > { %v1174_v25 = vpop.f32.mrf.mxu1 }
 0x239   : > { %v1175_v26 = vpop.f32.mrf.mxu1 }
 0x23a   : > { %v1176_v28 = vadd.f32 %v1175_v26, %v1174_v25 }
 0x23b   : > { %v1177_v27 = vpop.f32.mrf.mxu1 }
 0x23c   : > { %v828_v34 = vadd.f32 %v1176_v28, %v1114_v31 }
 0x23d   : > { %v1178_v29 = vpop.f32.mrf.mxu1 }
 0x23e   : > { %v1179_v32 = vadd.f32 %v1178_v29, %v1177_v27 }
 0x240   : > { %v831_v39 = vadd.f32 %v1179_v32, %v1114_v31 }
 0x257   : > { %v868_v35 = vpop.f32.mrf.mxu1 }
 0x258   : > { %v869_v36 = vadd.f32 %v868_v35, %v828_v34 }
 0x259   : > { %v1212_v37 = vpop.f32.mrf.mxu1 }
 0x25a   : > { %v958_v38 = vadd.f32 %v952_v33, %v869_v36 }
 0x25b   : > { %v871_v40 = vpop.f32.mrf.mxu1 }
 0x25c   : > { %v960_v42 = vmax.f32 %v958_v38, 0.0  ;;  %v872_v43 = vadd.f32 %v871_v40, %v831_v39 }
 0x25d   : > { %v1213_v44 = vpop.f32.mrf.mxu1 }
 0x25e   : > { %962 = vst [vmem:[%s341_s21] sm:$0xff] %v960_v42  ;;  %v959_v45 = vadd.f32 %v955_v41, %v872_v43 }
 0x260   : > { %v961_v46 = vmax.f32 %v959_v45, 0.0 }
 0x262   : > { %963 = vst [vmem:[%s341_s21 + $0x8] sm:$0xff] %v961_v46 }
 0x263   : > { %1478 = shalt.err (!%p1475_p9)
}
 0x264   : > { %s1479_s23 = scalar_lea.hbm %s1791_s18, 256  ;;  %s1483_s13 = scalar_lea.hbm %s1841_s7, 512 }
 0x265   : > { %p1480_p1 = scmp.ne.s32.totalorder %s1791_s18, %s1479_s23  ;;  %p1484_p11 = scmp.lt.s32.totalorder %s1791_s18, %s1841_s7 }
 0x266   : > { %p1485_p13 = scmp.lt.s32.totalorder %s1483_s13, %s1479_s23 }
 0x267   : > { %p1481_p8 = pnand %p1480_p1, %p1861_p6 }
 0x268   : > { %p1486_p2 = por %p1485_p13, %p1484_p11 }
 0x269   : > { %p1482_p10 = pneg %p1481_p8 }
 0x26b   : > { %p1487_p4 = pnand %p1486_p2, %p1482_p10 }
 0x26d   : > { %1490 = shalt.err (!%p1487_p4)
}
 0x26e   : > { %s1551_s15 = smov 128   ;;  %s1552_s22 = smov 8  }
 0x26f   : > { %1240 = dma.vmem_to_hbm [thread:$0]  (%p1861_p6), %s1786_s29, 256, %s1791_s18, %s965_s1, %s1551_s15, %s1551_s15, %s1552_s22  }
 0x270 PF: > { %s993_s19 = sand.u32 1, %s1525_s24   ;;  %p1862_p12 = scmp.ne.s32.totalorder %s1848_s8, 0 }
 0x271   : > { %p1863_p0 = scmp.ge.s32.totalorder %s1537_s27, 2  ;;  %s994_s28 = scalar_lea.sflag [#allocation5], %s993_s19 }
 0x273   : > { %p1257_p5 = pnand %p1863_p0, %p1862_p12 }
 0x275   : > { %p1258_p3 = pneg %p1257_p5 }
 0x277   : > { %1520 = dma.done.wait (%p1258_p3), %s994_s28, 256  }
 0x278   : > { %1522 = vsyncadd (%p1258_p3), %s994_s28, 4294967040  ;;  %p22_p7 = scmp.ge.s32.totalorder %s1673_s14, 4   ;;  %s1864_s24 = smov %s1529_s25 }
 0x279   : > { %s1865_s25 = smov %s1533_s26  ;;  %s1866_s26 = smov %s1683_s17 }
 0x27a   : > { %s1867_s27 = smov %s1673_s14  ;;  %24 = sbr.rel (!%p22_p7) target bundleno = 9 (0x9), region = 105 }
 0x27f   :  { %999 = vsyncpa [#allocation4], 1 }
 0x280   :  { %1001 = vsyncpa [#allocation4 + $0x1], 1 }
 0x281   :  { %1002 = vsyncpa [#allocation7], 1 }
 0x282   :  { %1003 = vsyncpa [#allocation10], 1 }
 0x283   :  { %1004 = vsyncpa [#allocation5], 1 }
 0x284   :  { %1006 = vsyncpa [#allocation5 + $0x1], 1 }

</bundles_post_ra>
